<compile_context>
chip_gen: v7x
topology: tpu7x:2x2x1
jax: 0.10.0
libtpu: 0.0.40
codegen_flags: <defaults>
</compile_context>

<pallas_src>
import jax
import jax.numpy as jnp
from jax.experimental import pallas as pl
from jax.experimental.pallas import tpu as pltpu

LANE = 128
SUBLANE = 8


def _round_up(x, m):
    return (x + m - 1) // m * m


def _round_down(x, m):
    return (x // m) * m


def logreg_kernel(x_ref, wt_ref, b_ref, o_ref, acc_ref):
    # x_ref:  (TB, TK) VMEM  -- streamed batch x feature tile
    # wt_ref: (TK, 1)  VMEM  -- weight column tile (pre-transposed in wrapper)
    # b_ref:  (1,)     SMEM  -- bias scalar
    # o_ref:  (TB, 1)  VMEM  -- output tile (revisited across k, written at k==last)
    # acc_ref:(TB, 1)  VMEM  -- f32 accumulator scratch
    k = pl.program_id(1)

    @pl.when(k == 0)
    def _():
        acc_ref[...] = jnp.zeros_like(acc_ref)

    acc_ref[...] += jnp.dot(x_ref[...], wt_ref[...],
                            preferred_element_type=jnp.float32)

    @pl.when(k == pl.num_programs(1) - 1)
    def _():
        z = acc_ref[...] + b_ref[0]
        o_ref[...] = (1.0 / (1.0 + jnp.exp(-z))).astype(o_ref.dtype)


def _choose_tiles(B, D, itemsize, budget, tb_max):
    """Pick (TB, TK) for the x BlockSpec given a double-buffered VMEM budget."""
    Dp = _round_up(D, LANE)                      # lane-padded feature width in VMEM
    tb_full = budget // (2 * Dp * itemsize)      # rows/step keeping the full feature dim

    def clamp_tb(tb):
        tb = min(tb, tb_max)
        if tb >= B:
            return B                             # one block spans the whole batch dim
        return max(SUBLANE, _round_down(tb, SUBLANE))

    if tb_full >= 512 or tb_full >= B or D % LANE != 0:
        # Whole feature dim per grid step (num_k == 1); reads along K are exact.
        # TODO(synk): very large D that is NOT a multiple of 128 keeps TK == D and
        # makes the lane-padded (D, 1) weight tile costly; a masked K-tiling path
        # would remove that corner case.
        return clamp_tb(max(tb_full, SUBLANE)), D

    # Large, 128-divisible D: add a feature-reduction axis so TB can stay >= 512.
    tk_cap = max(LANE, _round_down(budget // (2 * 512 * itemsize), LANE))
    tk = LANE
    cand = min(tk_cap, _round_down(D, LANE))
    while cand >= LANE:
        if D % cand == 0:          # exact divisor -> no ragged K blocks ever
            tk = cand
            break
        cand -= LANE
    return clamp_tb(budget // (2 * tk * itemsize)), tk


def logistic_regression(x, w, b, *, x_budget_bytes=16 << 20, tb_max=2048,
                        use_pallas=None):
    """sigmoid(x @ w.T + b).  x: (B, D), w: (1, D), b: (1,) or ()  ->  (B, 1)."""
    B, D = x.shape
    assert w.shape == (1, D)
    b1 = jnp.asarray(b, dtype=jnp.float32).reshape((1,))

    if use_pallas is None:
        # Below ~1 MiB of activations, launch + per-step overhead dominates: let XLA do it.
        use_pallas = x.size * x.dtype.itemsize >= (1 << 20)
    if not use_pallas:
        return jax.nn.sigmoid(jnp.dot(x, jnp.reshape(w, (D, 1))) + b1).astype(x.dtype)

    itemsize = x.dtype.itemsize
    TB, TK = _choose_tiles(B, D, itemsize, x_budget_bytes, tb_max)
    num_b = pl.cdiv(B, TB)
    num_k = pl.cdiv(D, TK)

    # One-time tiny (1, D) -> (D, 1) reshape so the in-kernel matmul is a plain
    # LHS(TB,TK) x RHS(TK,1) contraction (no transpose of the big x block).
    wt = jnp.reshape(w, (D, 1)).astype(x.dtype)

    # Explicit scoped-VMEM limit, derived from actual (lane/sublane padded) tile sizes.
    tkp = _round_up(TK, LANE)
    tbp = _round_up(min(TB, B), SUBLANE)
    need = (2 * tbp * tkp * itemsize                       # x tiles, double-buffered
            + 2 * _round_up(TK, SUBLANE) * LANE * itemsize  # w^T tiles (lane-padded)
            + 2 * tbp * LANE * itemsize                     # output tiles (lane-padded)
            + tbp * LANE * 4)                               # f32 accumulator scratch
    vmem_limit = int(min(max(need + (4 << 20), 32 << 20), 56 << 20))

    out = pl.pallas_call(
        logreg_kernel,
        out_shape=jax.ShapeDtypeStruct((B, 1), x.dtype),
        grid_spec=pltpu.PrefetchScalarGridSpec(
            num_scalar_prefetch=0,
            grid=(num_b, num_k),
            in_specs=[
                # x: (TB, TK) tile per step, default double-buffering (spend spare
                # VMEM on a bigger TB, not deeper buffering).
                pl.BlockSpec((TB, TK), lambda i, k: (i, k)),
                # w^T: (TK, 1) column tile; constant along the batch axis.
                pl.BlockSpec((TK, 1), lambda i, k: (k, 0)),
                # bias: SMEM scalar.
                pl.BlockSpec(memory_space=pltpu.MemorySpace.SMEM),
            ],
            # Output tile revisited across k, written only at the last k step.
            out_specs=pl.BlockSpec((TB, 1), lambda i, k: (i, 0)),
            scratch_shapes=[pltpu.VMEM((TB, 1), jnp.float32)],
        ),
        compiler_params=pltpu.CompilerParams(
            dimension_semantics=("parallel", "arbitrary"),
            vmem_limit_bytes=vmem_limit,
        ),
    )(x, wt, b1)
    return out


if __name__ == "__main__":
    key = jax.random.PRNGKey(0)
    kx, kw, kb = jax.random.split(key, 3)

    B, D = 8, 32  # batch=8, input_dims=32
    x = jax.random.normal(kx, (B, D), dtype=jnp.float32)

    # Deterministic init mimicking nn.Linear(input_dims, 1): W (1, D), b (1,)
    bound = 1.0 / (D ** 0.5)
    w = jax.random.uniform(kw, (1, D), minval=-bound, maxval=bound, dtype=jnp.float32)
    b = jax.random.uniform(kb, (1,), minval=-bound, maxval=bound, dtype=jnp.float32)

    # Force the Pallas path so the kernel itself is exercised at this tiny size.
    out = logistic_regression(x, w, b, use_pallas=True)
    jax.block_until_ready(out)

    # Reference check in plain JAX.
    ref = jax.nn.sigmoid(x @ w.T + b)
    assert out.shape == (B, 1)
    assert jnp.allclose(out, ref, atol=1e-5, rtol=1e-5)

    print("KERNEL_OK")
</pallas_src>

<mosaic_0001>
module attributes {stable_mosaic.version = 11 : i64} {
  func.func @logreg_kernel(%arg0: i32, %arg1: i32, %arg2: memref<8x32xf32, #tpu.memory_space<vmem>>, %arg3: memref<32x1xf32, #tpu.memory_space<vmem>>, %arg4: memref<1xf32, #tpu.memory_space<smem>>, %arg5: memref<8x1xf32, #tpu.memory_space<vmem>>, %arg6: memref<8x1xf32, #tpu.memory_space<vmem>>) attributes {dimension_semantics = [#tpu.dimension_semantics<parallel>, #tpu.dimension_semantics<arbitrary>], iteration_bounds = array<i64: 1, 1>, scalar_prefetch = 0 : i64, scratch_operands = 1 : i64, tpu.core_type = #tpu.core_type<tc>, window_params = [{transform_indices = @transform_0, window_bounds = array<i64: 8, 32>}, {transform_indices = @transform_1, window_bounds = array<i64: 32, 1>}, {transform_indices = @transform_2, window_bounds = array<i64: 1>}, {transform_indices = @transform_3, window_bounds = array<i64: 8, 1>}]} {
    %c0_i32 = arith.constant 0 : i32
    %0 = arith.cmpi eq, %arg1, %c0_i32 : i32
    %1 = arith.extui %0 : i1 to i32
    %c0_i32_0 = arith.constant 0 : i32
    %2 = arith.cmpi ne, %1, %c0_i32_0 : i32
    scf.if %2 {
      %cst_10 = arith.constant 0.000000e+00 : f32
      %12 = vector.broadcast %cst_10 : f32 to vector<8x1xf32>
      %c0_11 = arith.constant 0 : index
      %c0_12 = arith.constant 0 : index
      %13 = vector.load %arg6[%c0_11, %c0_12] : memref<8x1xf32, #tpu.memory_space<vmem>>, vector<8x1xf32>
      tpu.vector_store %arg6[%c0_11, %c0_12], %12 {strides = array<i32>} : memref<8x1xf32, #tpu.memory_space<vmem>>, vector<8x1xf32>,
    } else {
    }
    %c0 = arith.constant 0 : index
    %c0_1 = arith.constant 0 : index
    %3 = vector.load %arg6[%c0, %c0_1] : memref<8x1xf32, #tpu.memory_space<vmem>>, vector<8x1xf32>
    %c0_2 = arith.constant 0 : index
    %c0_3 = arith.constant 0 : index
    %4 = vector.load %arg2[%c0_2, %c0_3] : memref<8x32xf32, #tpu.memory_space<vmem>>, vector<8x32xf32>
    %c0_4 = arith.constant 0 : index
    %c0_5 = arith.constant 0 : index
    %5 = vector.load %arg3[%c0_4, %c0_5] : memref<32x1xf32, #tpu.memory_space<vmem>>, vector<32x1xf32>
    %cst = arith.constant dense<0.000000e+00> : vector<8x1xf32>
    %6 = tpu.matmul %4, %5, %cst {dimension_numbers = #tpu.dot_dimension_numbers<[1], [0], [0], [1], [0, 0, 1, 1], [], []>} : vector<8x32xf32>, vector<32x1xf32>, vector<8x1xf32> -> vector<8x1xf32>
    %7 = arith.addf %3, %6 : vector<8x1xf32>
    %c0_6 = arith.constant 0 : index
    %c0_7 = arith.constant 0 : index
    %8 = vector.load %arg6[%c0_6, %c0_7] : memref<8x1xf32, #tpu.memory_space<vmem>>, vector<8x1xf32>
    tpu.vector_store %arg6[%c0_6, %c0_7], %7 {strides = array<i32>} : memref<8x1xf32, #tpu.memory_space<vmem>>, vector<8x1xf32>,
    %c0_i32_8 = arith.constant 0 : i32
    %9 = arith.cmpi eq, %arg1, %c0_i32_8 : i32
    %10 = arith.extui %9 : i1 to i32
    %c0_i32_9 = arith.constant 0 : i32
    %11 = arith.cmpi ne, %10, %c0_i32_9 : i32
    scf.if %11 {
      %c0_10 = arith.constant 0 : index
      %c0_11 = arith.constant 0 : index
      %12 = vector.load %arg6[%c0_10, %c0_11] : memref<8x1xf32, #tpu.memory_space<vmem>>, vector<8x1xf32>
      %c0_12 = arith.constant 0 : index
      %13 = memref.load %arg4[%c0_12] : memref<1xf32, #tpu.memory_space<smem>>
      %14 = vector.broadcast %13 : f32 to vector<8x1xf32>
      %15 = arith.addf %12, %14 : vector<8x1xf32>
      %cst_13 = arith.constant 0.000000e+00 : f32
      %16 = vector.broadcast %cst_13 : f32 to vector<8x1xf32>
      %17 = arith.subf %16, %15 : vector<8x1xf32>
      %18 = math.exp %17 : vector<8x1xf32>
      %cst_14 = arith.constant 1.000000e+00 : f32
      %19 = vector.broadcast %cst_14 : f32 to vector<8x1xf32>
      %20 = arith.addf %19, %18 : vector<8x1xf32>
      %cst_15 = arith.constant 1.000000e+00 : f32
      %21 = vector.broadcast %cst_15 : f32 to vector<8x1xf32>
      %22 = arith.divf %21, %20 : vector<8x1xf32>
      %c0_16 = arith.constant 0 : index
      %c0_17 = arith.constant 0 : index
      %23 = vector.load %arg5[%c0_16, %c0_17] : memref<8x1xf32, #tpu.memory_space<vmem>>, vector<8x1xf32>
      tpu.vector_store %arg5[%c0_16, %c0_17], %22 {strides = array<i32>} : memref<8x1xf32, #tpu.memory_space<vmem>>, vector<8x1xf32>,
    } else {
    }
    return
  }
  func.func @transform_0(%arg0: i32, %arg1: i32) -> (i32, i32) {
    %c0_i32 = arith.constant 0 : i32
    return %arg0, %arg1 : i32, i32
  }
  func.func @transform_1(%arg0: i32, %arg1: i32) -> (i32, i32) {
    %c0_i32 = arith.constant 0 : i32
    %c0_i32_0 = arith.constant 0 : i32
    return %arg1, %c0_i32 : i32, i32
  }
  func.func @transform_2(%arg0: i32, %arg1: i32) -> i32 {
    %c0_i32 = arith.constant 0 : i32
    %c0_i32_0 = arith.constant 0 : i32
    return %c0_i32 : i32
  }
  func.func @transform_3(%arg0: i32, %arg1: i32) -> (i32, i32) {
    %c0_i32 = arith.constant 0 : i32
    %c0_i32_0 = arith.constant 0 : i32
    return %arg0, %c0_i32 : i32, i32
  }
}

</mosaic_0001>

<bundles_post_ra>
// kernel: tpu_custom_call.1
= control target key start
LH: loop header
LB: loop body
LE: loop exit
PB: predicated region body
PF: predicated region fallthrough
CT: control target
= control target key end

     0   :  { %vm19_vm0 = vcmask 7168   ;;  %v152_v0 = vmov 0.0|0.0   ;;  %v153_v4 = vmov 0.0   ;;  %vm154_vm1 = vmmov 0   ;;  %s199_s1 = inlined_call_operand.vmem [shape: f32[32,1], index: 1, kind: input, shape index: {}]   ;;  %s200_s0 = inlined_call_operand.vmem [shape: f32[8,32], index: 0, kind: input, shape index: {}]   ;;  %s201_s2 = inlined_call_operand.<no memory space> [shape: f32[1], index: 2, kind: input, shape index: {}]   ;;  %s202_s3 = inlined_call_operand.vmem [shape: f32[8,1], index: 3, kind: output, shape index: {}]  }
   0x1   :  { %139 = vmatprep.subr.bf16.mxu0 %v152_v0  ;;  %v23_v1 = vld [vmem:[%s199_s1] sm:$0xff]  ;;  %v24_v2 = vld [vmem:[%s199_s1 + $0x8] sm:$0xff]  ;;  %v25_v3 = vld [vmem:[%s199_s1 + $0x10] sm:$0xff]  ;;  %20 = vst.msk [vmem:[#allocation2] sm:$0xff] %vm19_vm0, %v153_v4  ;;  %136 = vmatprep.mubr.msk.f32.mxu0 %vm154_vm1, %v153_v4  ;;  %vm27_vm2 = vcmask 261120   ;;  %v109_v13 = vstv %s201_s2 }
   0x2   :  { %v140_v5 = vpack.c.bf16 %v24_v2, %v23_v1  ;;  %v26_v6 = vld [vmem:[%s199_s1 + $0x18] sm:$0xff]  ;;  %v22_v8 = vld [vmem:[%s200_s0] sm:$0xff] }
   0x3   :  { %v143_v7 = vpack.c.bf16 %v26_v6, %v25_v3 }
   0x4   :  { %141 = vmatpush3.bf16.msra.mxu0 %v140_v5 }
   0x5   :  { %142 = vmatprep.subr.bf16.mxu0 %v152_v0 }
   0x8   :  { %144 = vmatpush3.bf16.msra.mxu0 %v143_v7  ;;  %v21_v9 = vld [vmem:[#allocation2] sm:$0xff] }
   0xb   :  { %137 = vmatmul.mubr.msk.f32.vlgmr.msra.gmra.mrb[0].mxu0 %vm27_vm2, %v22_v8 }
  0xde   :  { %v97_v10 = vpop.f32.mrb[0].mxu0 }
  0xdf   :  { %v101_v11 = vadd.f32 %v97_v10, %v21_v9  ;;  %v138_v12 = vpop.f32.mrb[1].mxu0 }
  0xe1   :  { %103 = vst.msk [vmem:[#allocation2] sm:$0xff] %vm19_vm0, %v101_v11 }
  0xe8   :  { %v107_v14 = vld [vmem:[#allocation2] sm:$0xff] }
  0xe9   :  { %v110_v15 = vadd.f32 %v109_v13, %v107_v14 }
  0xeb   :  { %v111_v16 = vsub.f32 0.0, %v110_v15 }
  0xed   :  { %v112_v17 = vmul.f32 1.442695, %v111_v16 }
  0xef   :  { %148 = vpow2.f32 %v112_v17 }
  0xf9   :  { %v149_v18 = vpop.eup %148 }
  0xfa   :  { %v114_v19 = vadd.f32 1.0, %v149_v18 }
  0xfc   :  { %150 = vrcp.f32 %v114_v19 }
 0x106   :  { %v151_v20 = vpop.eup %150 }
 0x107   :  { %117 = vst.msk [vmem:[%s202_s3] sm:$0xff] %vm19_vm0, %v151_v20 }

</bundles_post_ra>
